<compile_context>
chip_gen: v5e
topology: v5e:2x2
jax: 0.10.0
libtpu: 0.0.40
codegen_flags: <defaults>
</compile_context>

<pallas_src>
import functools

import jax
import jax.numpy as jnp
from jax.experimental import pallas as pl
from jax.experimental.pallas import tpu as pltpu


def _qnet_kernel(x_ref, w1_ref, b1_ref, w2_ref, b2_ref, w3_ref, b3_ref, q_ref):
    """Whole 3-layer MLP forward for one batch tile, entirely in VMEM."""
    x = x_ref[...]                                   # already in compute dtype

    h1 = jnp.dot(x, w1_ref[...], preferred_element_type=jnp.float32) + b1_ref[...]
    h1 = jnp.maximum(h1, 0.0).astype(w2_ref.dtype)   # relu (no-op cast for f32)

    h2 = jnp.dot(h1, w2_ref[...], preferred_element_type=jnp.float32) + b2_ref[...]
    h2 = jnp.maximum(h2, 0.0).astype(w3_ref.dtype)   # relu

    q = jnp.dot(h2, w3_ref[...], preferred_element_type=jnp.float32) + b3_ref[...]
    q_ref[...] = q.astype(q_ref.dtype)               # (tb, ac_dim) store, full last dim


def prepare_qnet_params(params, compute_dtype=jnp.float32):
    """One-time conversion of PyTorch-layout params into kernel layout.

    Transposes weights to (in, out) and reshapes biases to (1, out) rows so the
    kernel is plain y = x @ W + b on the MXU. Do this once at init, NOT per
    forward call.

    compute_dtype=jnp.bfloat16 is recommended on ALL TPU generations
    (v5e/v6e/v7x): the MXU is bf16-native and accumulation stays f32 inside
    the kernel, so only the matmul inputs lose precision.
    """
    w1, b1, w2, b2, w3, b3 = params

    w1t = w1.T.astype(compute_dtype)               # (in_dim, h_dim)
    w2t = w2.T.astype(compute_dtype)               # (h_dim, h_dim)
    w3t = w3.T.astype(compute_dtype)               # (h_dim, ac_dim)  -- no lane padding

    b1r = b1.reshape(1, -1).astype(jnp.float32)    # (1, h_dim)
    b2r = b2.reshape(1, -1).astype(jnp.float32)    # (1, h_dim)
    b3r = b3.reshape(1, -1).astype(jnp.float32)    # (1, ac_dim)

    return (w1t, b1r, w2t, b2r, w3t, b3r)


def _round_up(x, m):
    return ((x + m - 1) // m) * m


def _choose_batch_tile(B, block_b, in_dim, ac_dim, h_dim,
                       compute_bytes, out_bytes):
    """Pick a batch tile: big (amortize grid overhead), >=2 steps for v7x
    megacore on mid-size batches, and VMEM-safe on all generations."""
    if B < 256:
        tb = B                                        # single step, tb == full dim
    elif B <= 2 * block_b:
        tb = min(_round_up(-(-B // 2), 8), B)         # 2 steps -> both v7x TCs busy
    else:
        tb = block_b

    # Conservative VMEM budget (fits v5e's 16 MiB scoped default and v7x's
    # 32 MiB scoped / 64 MiB physical).  Double-buffered x & q per row, plus
    # double-buffered resident weights/biases.
    budget = 12 * 1024 * 1024
    weight_bytes = (in_dim * h_dim + h_dim * h_dim + h_dim * ac_dim) * compute_bytes \
        + (2 * h_dim + ac_dim) * 4
    per_row = 2 * (in_dim * compute_bytes + ac_dim * out_bytes)
    avail = budget - 2 * weight_bytes
    if avail > 0:
        cap = max(8, (avail // per_row) // 8 * 8)
        tb = min(tb, cap)
    return tb


@functools.partial(jax.jit, static_argnames=("block_b",))
def qnet_forward(obs_with_id, prepared_params, block_b=1024):
    """obs_with_id: (B, ob_dim + n_agents). Returns (B, ac_dim) in input dtype."""
    w1t, b1r, w2t, b2r, w3t, b3r = prepared_params
    B, in_dim = obs_with_id.shape
    h_dim = w1t.shape[1]
    ac_dim = w3t.shape[1]
    compute_dtype = w1t.dtype

    x = obs_with_id.astype(compute_dtype)

    tb = _choose_batch_tile(
        B, block_b, in_dim, ac_dim, h_dim,
        compute_bytes=jnp.dtype(compute_dtype).itemsize,
        out_bytes=jnp.dtype(obs_with_id.dtype).itemsize)
    grid = (pl.cdiv(B, tb),)

    full = lambda i: (0, 0)   # weights/biases: single block, resident across grid

    q = pl.pallas_call(
        _qnet_kernel,
        out_shape=jax.ShapeDtypeStruct((B, ac_dim), obs_with_id.dtype),
        grid_spec=pl.GridSpec(
            grid=grid,
            in_specs=[
                pl.BlockSpec((tb, in_dim), lambda i: (i, 0)),   # x tile
                pl.BlockSpec((in_dim, h_dim), full),            # W1^T
                pl.BlockSpec((1, h_dim), full),                 # b1
                pl.BlockSpec((h_dim, h_dim), full),             # W2^T
                pl.BlockSpec((1, h_dim), full),                 # b2
                pl.BlockSpec((h_dim, ac_dim), full),            # W3^T
                pl.BlockSpec((1, ac_dim), full),                # b3
            ],
            out_specs=pl.BlockSpec((tb, ac_dim), lambda i: (i, 0)),
        ),
        compiler_params=pltpu.CompilerParams(
            dimension_semantics=("parallel",)),
    )(x, w1t, b1r, w2t, b2r, w3t, b3r)

    return q


def init_qnet_params(key, ob_dim, ac_dim, n_agents, h_dim=256):
    """Deterministic init mimicking nn.Linear's U(-1/sqrt(fan_in), 1/sqrt(fan_in)).

    Returns PyTorch-layout params: weights (out, in), biases (out,).
    """
    in_dim = ob_dim + n_agents
    ks = jax.random.split(key, 6)

    def linear(kw, kb, fan_in, fan_out):
        bound = 1.0 / jnp.sqrt(float(fan_in))
        w = jax.random.uniform(kw, (fan_out, fan_in), jnp.float32, -bound, bound)
        b = jax.random.uniform(kb, (fan_out,), jnp.float32, -bound, bound)
        return w, b

    w1, b1 = linear(ks[0], ks[1], in_dim, h_dim)
    w2, b2 = linear(ks[2], ks[3], h_dim, h_dim)
    w3, b3 = linear(ks[4], ks[5], h_dim, ac_dim)
    return (w1, b1, w2, b2, w3, b3)


def qnet_reference(obs_with_id, params):
    """Pure-JAX reference matching the PyTorch forward exactly."""
    w1, b1, w2, b2, w3, b3 = params
    x = jnp.maximum(obs_with_id @ w1.T + b1, 0.0)
    h = jnp.maximum(x @ w2.T + b2, 0.0)
    return h @ w3.T + b3


if __name__ == "__main__":
    # Small shapes consistent with the module: ob_dim=16, n_agents=4, ac_dim=6, h_dim=32
    ob_dim, ac_dim, n_agents, h_dim = 16, 6, 4, 32

    key = jax.random.PRNGKey(0)
    kx, kp, kx2, kx3 = jax.random.split(key, 4)
    params = init_qnet_params(kp, ob_dim, ac_dim, n_agents, h_dim)

    # One-time param prep (transpose + bias reshape), outside the hot loop.
    prepared_f32 = prepare_qnet_params(params, compute_dtype=jnp.float32)

    # Case 1: tiny batch (single grid step, tb == B).
    batch = 8
    obs = jax.random.normal(kx, (batch, ob_dim + n_agents), jnp.float32)
    q = jax.block_until_ready(qnet_forward(obs, prepared_f32))
    q_ref = qnet_reference(obs, params)
    assert q.shape == (batch, ac_dim)
    assert jnp.allclose(q, q_ref, atol=1e-5, rtol=1e-5), "mismatch vs reference (case 1)"

    # Case 2: mid-size batch -> 2 parallel grid steps (v7x megacore path).
    batch2 = 256
    obs2 = jax.random.normal(kx2, (batch2, ob_dim + n_agents), jnp.float32)
    q2 = jax.block_until_ready(qnet_forward(obs2, prepared_f32))
    q2_ref = qnet_reference(obs2, params)
    assert q2.shape == (batch2, ac_dim)
    assert jnp.allclose(q2, q2_ref, atol=1e-5, rtol=1e-5), "mismatch vs reference (case 2)"

    # Case 3: bf16 compute path (f32 accumulation), loose tolerance by design.
    prepared_bf16 = prepare_qnet_params(params, compute_dtype=jnp.bfloat16)
    batch3 = 64
    obs3 = jax.random.normal(kx3, (batch3, ob_dim + n_agents), jnp.float32)
    q3 = jax.block_until_ready(qnet_forward(obs3, prepared_bf16))
    q3_ref = qnet_reference(obs3, params)
    assert q3.shape == (batch3, ac_dim)
    assert jnp.allclose(q3, q3_ref, atol=0.2, rtol=0.1), "mismatch vs reference (case 3, bf16)"

    print("KERNEL_OK")
</pallas_src>

<mosaic_0001>
module attributes {stable_mosaic.version = 11 : i64} {
  func.func @_qnet_kernel(%arg0: i32, %arg1: memref<8x20xf32, #tpu.memory_space<vmem>>, %arg2: memref<20x32xf32, #tpu.memory_space<vmem>>, %arg3: memref<1x32xf32, #tpu.memory_space<vmem>>, %arg4: memref<32x32xf32, #tpu.memory_space<vmem>>, %arg5: memref<1x32xf32, #tpu.memory_space<vmem>>, %arg6: memref<32x6xf32, #tpu.memory_space<vmem>>, %arg7: memref<1x6xf32, #tpu.memory_space<vmem>>, %arg8: memref<8x6xf32, #tpu.memory_space<vmem>>) attributes {dimension_semantics = [#tpu.dimension_semantics<parallel>], iteration_bounds = array<i64: 1>, scalar_prefetch = 0 : i64, scratch_operands = 0 : i64, tpu.core_type = #tpu.core_type<tc>, window_params = [{transform_indices = @transform_0, window_bounds = array<i64: 8, 20>}, {pipeline_mode = #tpu.pipeline_mode<synchronous>, transform_indices = @transform_1, window_bounds = array<i64: 20, 32>}, {pipeline_mode = #tpu.pipeline_mode<synchronous>, transform_indices = @transform_2, window_bounds = array<i64: 1, 32>}, {pipeline_mode = #tpu.pipeline_mode<synchronous>, transform_indices = @transform_3, window_bounds = array<i64: 32, 32>}, {pipeline_mode = #tpu.pipeline_mode<synchronous>, transform_indices = @transform_4, window_bounds = array<i64: 1, 32>}, {pipeline_mode = #tpu.pipeline_mode<synchronous>, transform_indices = @transform_5, window_bounds = array<i64: 32, 6>}, {pipeline_mode = #tpu.pipeline_mode<synchronous>, transform_indices = @transform_6, window_bounds = array<i64: 1, 6>}, {transform_indices = @transform_7, window_bounds = array<i64: 8, 6>}]} {
    %c0 = arith.constant 0 : index
    %c0_0 = arith.constant 0 : index
    %0 = vector.load %arg1[%c0, %c0_0] : memref<8x20xf32, #tpu.memory_space<vmem>>, vector<8x20xf32>
    %c0_1 = arith.constant 0 : index
    %c0_2 = arith.constant 0 : index
    %1 = vector.load %arg2[%c0_1, %c0_2] : memref<20x32xf32, #tpu.memory_space<vmem>>, vector<20x32xf32>
    %cst = arith.constant dense<0.000000e+00> : vector<8x32xf32>
    %2 = tpu.matmul %0, %1, %cst {dimension_numbers = #tpu.dot_dimension_numbers<[1], [0], [0], [1], [0, 0, 1, 1], [], []>} : vector<8x20xf32>, vector<20x32xf32>, vector<8x32xf32> -> vector<8x32xf32>
    %c0_3 = arith.constant 0 : index
    %c0_4 = arith.constant 0 : index
    %3 = vector.load %arg3[%c0_3, %c0_4] : memref<1x32xf32, #tpu.memory_space<vmem>>, vector<1x32xf32>
    %4 = vector.broadcast %3 : vector<1x32xf32> to vector<8x32xf32>
    %5 = arith.addf %2, %4 : vector<8x32xf32>
    %cst_5 = arith.constant 0.000000e+00 : f32
    %6 = vector.broadcast %cst_5 : f32 to vector<8x32xf32>
    %7 = arith.maximumf %5, %6 : vector<8x32xf32>
    %c0_6 = arith.constant 0 : index
    %c0_7 = arith.constant 0 : index
    %8 = vector.load %arg4[%c0_6, %c0_7] : memref<32x32xf32, #tpu.memory_space<vmem>>, vector<32x32xf32>
    %cst_8 = arith.constant dense<0.000000e+00> : vector<8x32xf32>
    %9 = tpu.matmul %7, %8, %cst_8 {dimension_numbers = #tpu.dot_dimension_numbers<[1], [0], [0], [1], [0, 0, 1, 1], [], []>} : vector<8x32xf32>, vector<32x32xf32>, vector<8x32xf32> -> vector<8x32xf32>
    %c0_9 = arith.constant 0 : index
    %c0_10 = arith.constant 0 : index
    %10 = vector.load %arg5[%c0_9, %c0_10] : memref<1x32xf32, #tpu.memory_space<vmem>>, vector<1x32xf32>
    %11 = vector.broadcast %10 : vector<1x32xf32> to vector<8x32xf32>
    %12 = arith.addf %9, %11 : vector<8x32xf32>
    %cst_11 = arith.constant 0.000000e+00 : f32
    %13 = vector.broadcast %cst_11 : f32 to vector<8x32xf32>
    %14 = arith.maximumf %12, %13 : vector<8x32xf32>
    %c0_12 = arith.constant 0 : index
    %c0_13 = arith.constant 0 : index
    %15 = vector.load %arg6[%c0_12, %c0_13] : memref<32x6xf32, #tpu.memory_space<vmem>>, vector<32x6xf32>
    %cst_14 = arith.constant dense<0.000000e+00> : vector<8x6xf32>
    %16 = tpu.matmul %14, %15, %cst_14 {dimension_numbers = #tpu.dot_dimension_numbers<[1], [0], [0], [1], [0, 0, 1, 1], [], []>} : vector<8x32xf32>, vector<32x6xf32>, vector<8x6xf32> -> vector<8x6xf32>
    %c0_15 = arith.constant 0 : index
    %c0_16 = arith.constant 0 : index
    %17 = vector.load %arg7[%c0_15, %c0_16] : memref<1x6xf32, #tpu.memory_space<vmem>>, vector<1x6xf32>
    %18 = vector.broadcast %17 : vector<1x6xf32> to vector<8x6xf32>
    %19 = arith.addf %16, %18 : vector<8x6xf32>
    %c0_17 = arith.constant 0 : index
    %c0_18 = arith.constant 0 : index
    %20 = vector.load %arg8[%c0_17, %c0_18] : memref<8x6xf32, #tpu.memory_space<vmem>>, vector<8x6xf32>
    tpu.vector_store %arg8[%c0_17, %c0_18], %19 {strides = array<i32>} : memref<8x6xf32, #tpu.memory_space<vmem>>, vector<8x6xf32>,
    return
  }
  func.func @transform_0(%arg0: i32) -> (i32, i32) {
    %c0_i32 = arith.constant 0 : i32
    %c0_i32_0 = arith.constant 0 : i32
    return %arg0, %c0_i32 : i32, i32
  }
  func.func @transform_1(%arg0: i32) -> (i32, i32) {
    %c0_i32 = arith.constant 0 : i32
    %c0_i32_0 = arith.constant 0 : i32
    %c0_i32_1 = arith.constant 0 : i32
    return %c0_i32, %c0_i32_0 : i32, i32
  }
  func.func @transform_2(%arg0: i32) -> (i32, i32) {
    %c0_i32 = arith.constant 0 : i32
    %c0_i32_0 = arith.constant 0 : i32
    %c0_i32_1 = arith.constant 0 : i32
    return %c0_i32, %c0_i32_0 : i32, i32
  }
  func.func @transform_3(%arg0: i32) -> (i32, i32) {
    %c0_i32 = arith.constant 0 : i32
    %c0_i32_0 = arith.constant 0 : i32
    %c0_i32_1 = arith.constant 0 : i32
    return %c0_i32, %c0_i32_0 : i32, i32
  }
  func.func @transform_4(%arg0: i32) -> (i32, i32) {
    %c0_i32 = arith.constant 0 : i32
    %c0_i32_0 = arith.constant 0 : i32
    %c0_i32_1 = arith.constant 0 : i32
    return %c0_i32, %c0_i32_0 : i32, i32
  }
  func.func @transform_5(%arg0: i32) -> (i32, i32) {
    %c0_i32 = arith.constant 0 : i32
    %c0_i32_0 = arith.constant 0 : i32
    %c0_i32_1 = arith.constant 0 : i32
    return %c0_i32, %c0_i32_0 : i32, i32
  }
  func.func @transform_6(%arg0: i32) -> (i32, i32) {
    %c0_i32 = arith.constant 0 : i32
    %c0_i32_0 = arith.constant 0 : i32
    %c0_i32_1 = arith.constant 0 : i32
    return %c0_i32, %c0_i32_0 : i32, i32
  }
  func.func @transform_7(%arg0: i32) -> (i32, i32) {
    %c0_i32 = arith.constant 0 : i32
    %c0_i32_0 = arith.constant 0 : i32
    return %arg0, %c0_i32 : i32, i32
  }
}

</mosaic_0001>

<bundles_post_ra>
// kernel: qnet_forward.1
= control target key start
LH: loop header
LB: loop body
LE: loop exit
PB: predicated region body
PF: predicated region fallthrough
CT: control target
= control target key end

     0   :  { %12 = vsyncpa [#allocation3], 0  ;;  %s312_s0 = inlined_call_operand.vmem [shape: f32[8,20], index: 0, kind: input, shape index: {}]   ;;  %s313_s1 = inlined_call_operand.hbm [shape: f32[20,32], index: 1, kind: input, shape index: {}]   ;;  %s314_s2 = inlined_call_operand.vmem [shape: f32[1,32], index: 2, kind: input, shape index: {}]   ;;  %s315_s3 = inlined_call_operand.vmem [shape: f32[32,32], index: 3, kind: input, shape index: {}]   ;;  %s316_s4 = inlined_call_operand.vmem [shape: f32[1,32], index: 4, kind: input, shape index: {}]   ;;  %s317_s5 = inlined_call_operand.vmem [shape: f32[32,6], index: 5, kind: input, shape index: {}]   ;;  %s318_s6 = inlined_call_operand.vmem [shape: f32[1,6], index: 6, kind: input, shape index: {}]   ;;  %s319_s7 = inlined_call_operand.hbm [shape: f32[8,6], index: 7, kind: output, shape index: {}]  }
   0x1   :  { %13 = vsyncpa [#allocation4], 0  ;;  %s20_s26 = sshll.u32 %s313_s1, 4  ;;  %s226_s27 = smov [#allocation2]   ;;  %s21_s26 = int_to_ptr.hbm [resolvable:$true] %s20_s26 }
   0x2   :  { %s22_s28 = sshll.u32 %s226_s27, 4  ;;  %s227_s29 = smov 128   ;;  %s23_s28 = int_to_ptr.vmem [resolvable:$true] %s22_s28 }
   0x3   :  { %s228_s30 = smov 8  }
   0x4   :  { %28 = dma.hbm_to_vmem [thread:$0]  %s21_s26, 384, %s23_s28, [#allocation3], %s227_s29, %s227_s29, %s228_s30  }
   0x5   :  { %222 = dma.done.wait [#allocation3], 384  }
   0x6   :  { %223 = vsyncadd [#allocation3], 4294966912  ;;  %vm55_vm0 = vcmask 1043456   ;;  %v46_v0 = vld [vmem:[#allocation2 + $0x10] sm:$0xf]  ;;  %v45_v1 = vld [vmem:[#allocation2 + $0x8] sm:$0xff] }
   0x7   :  { %163 = vmatpush.msk.msra.mxu0 %vm55_vm0, %v46_v0  ;;  %v83_v2 = vld [vmem:[%s315_s3 + $0x18] sm:$0xff]  ;;  %v44_v3 = vld [vmem:[#allocation2] sm:$0xff]  ;;  %vm51_vm1 = vcmask 162816   ;;  %v82_v5 = vld [vmem:[%s315_s3 + $0x10] sm:$0xff]  ;;  %vm88_vm2 = vcmask 261120   ;;  %s229_s28 = smov [#allocation5]  }
   0x8   :  { %104 = vmatpush.msra.mxu1 %v83_v2  ;;  %v43_v4 = vld [vmem:[%s312_s0] sm:$0xff]  ;;  %v81_v6 = vld [vmem:[%s315_s3 + $0x8] sm:$0xff]  ;;  %v116_v8 = vld [vmem:[%s317_s5 + $0x18] sm:$0xff]  ;;  %s151_s29 = sshll.u32 %s229_s28, 4  ;;  %s153_s9 = sshll.u32 %s319_s7, 4  ;;  %vm144_vm3 = vcmask 48128   ;;  %s152_s29 = int_to_ptr.vmem [resolvable:$true] %s151_s29  ;;  %s154_s9 = int_to_ptr.hbm [resolvable:$true] %s153_s9 }
   0x9   :  { %73 = vmatpush.msra.mxu0 %v45_v1  ;;  %v80_v7 = vld [vmem:[%s315_s3] sm:$0xff]  ;;  %136 = vmatpush.msra.mxu2 %v116_v8  ;;  %v115_v13 = vld [vmem:[%s317_s5 + $0x10] sm:$0xff]  ;;  %v114_v14 = vld [vmem:[%s317_s5 + $0x8] sm:$0xff] }
   0xa   :  { %105 = vmatpush.msra.mxu1 %v82_v5  ;;  %v171_v9 = vld [vmem:[%s314_s2] ss:$0 sm:$0xff] }
   0xb   :  { %74 = vmatpush.msra.mxu0 %v44_v3  ;;  %137 = vmatpush.msra.mxu2 %v115_v13  ;;  %v113_v15 = vld [vmem:[%s317_s5] sm:$0xff] }
   0xc   :  { %164 = vmatmul.msk.f32.vlgmr.msra.gmra.mxu0 %vm51_vm1, %v43_v4  ;;  %106 = vmatpush.msra.mxu1 %v81_v6  ;;  %v172_v16 = vld [vmem:[%s316_s4] ss:$0 sm:$0xff] }
   0xd   :  { %138 = vmatpush.msra.mxu2 %v114_v14  ;;  %v173_v20 = vld [vmem:[%s318_s6] ss:$0 sm:$0xff] }
   0xe   :  { %107 = vmatpush.msra.mxu1 %v80_v7 }
   0xf   :  { %139 = vmatpush.msra.mxu2 %v113_v15 }
  0x89   :  { %v76_v10 = vpop.f32.mrf.mxu0 }
  0x8a   :  { %v77_v11 = vadd.f32 %v171_v9, %v76_v10 }
  0x8c   :  { %v79_v12 = vmax.f32 %v77_v11, 0.0 }
  0x8e   :  { %165 = vmatmul.msk.f32.vlgmr.msra.gmra.mxu1 %vm88_vm2, %v79_v12 }
 0x10b   :  { %v109_v17 = vpop.f32.mrf.mxu1 }
 0x10c   :  { %v110_v18 = vadd.f32 %v172_v16, %v109_v17 }
 0x10e   :  { %v112_v19 = vmax.f32 %v110_v18, 0.0 }
 0x110   :  { %166 = vmatmul.msk.f32.vlgmr.msra.gmra.mxu2 %vm88_vm2, %v112_v19 }
 0x193   :  { %v141_v21 = vpop.f32.mrf.mxu2 }
 0x194   :  { %v142_v22 = vadd.f32 %v173_v20, %v141_v21 }
 0x196   :  { %145 = vst.msk [vmem:[#allocation5] sm:$0xff] %vm144_vm3, %v142_v22 }
 0x197   :  { %156 = dma.vmem_to_hbm [thread:$0]  %s152_s29, 128, %s154_s9, [#allocation4]  }
 0x198   :  { %224 = dma.done.wait [#allocation4], 128  }
 0x199   :  { %225 = vsyncadd [#allocation4], 4294967168 }
 0x19a   :  { %161 = vsyncpa [#allocation3], 1 }
 0x19b   :  { %162 = vsyncpa [#allocation4], 1 }

</bundles_post_ra>
